<compile_context>
chip_gen: v6e
topology: v6e:2x2x1
jax: 0.10.0
libtpu: 0.0.40
codegen_flags: <defaults>
</compile_context>

<pallas_src>
import math

import jax
import jax.numpy as jnp
from jax import lax
from jax.experimental import pallas as pl
from jax.experimental.pallas import tpu as pltpu


# ---------------------------------------------------------------------------
# helpers
# ---------------------------------------------------------------------------
def _pick_tile(dim, pref, multiple):
    """Largest tile <= pref that divides `dim` and is a multiple of `multiple`;
    falls back to the full dimension (always legal for BlockSpec last dims)."""
    if dim <= pref:
        return dim
    t = (pref // multiple) * multiple
    while t >= multiple:
        if dim % t == 0:
            return t
        t -= multiple
    # TODO(synk): pad awkward dims instead of falling back to one huge block.
    return dim


def _vmem_limit(block_bytes):
    # double-buffered blocks are already counted by the caller; add headroom for
    # compiler-internal scratch and cap at v7x's 64 MiB physical VMEM.
    return int(min(block_bytes + (8 << 20), 64 << 20))


# ---------------------------------------------------------------------------
# Tiled linear projection (x @ W + b), bf16 MXU inputs, f32 accumulation
# ---------------------------------------------------------------------------
def _linear_kernel(x_ref, w_ref, b_ref, o_ref, acc_ref):
    @pl.when(pl.program_id(2) == 0)
    def _init():
        acc_ref[...] = jnp.zeros_like(acc_ref)

    acc_ref[...] += jnp.dot(
        x_ref[...].astype(jnp.bfloat16),
        w_ref[...].astype(jnp.bfloat16),
        preferred_element_type=jnp.float32,
    )

    @pl.when(pl.program_id(2) == pl.num_programs(2) - 1)
    def _finalize():
        o_ref[...] = (acc_ref[...] + b_ref[...]).astype(o_ref.dtype)


def _linear(x, w, b, *, out_dtype=jnp.float32, tiles=(512, 512, 512)):
    M, K = x.shape
    N = w.shape[1]
    tm = _pick_tile(M, tiles[0], 8)
    tn = _pick_tile(N, tiles[1], 128)
    tk = _pick_tile(K, tiles[2], 128)
    grid = (M // tm, N // tn, K // tk)
    nbytes = 2 * (
        tm * tk * x.dtype.itemsize
        + tk * tn * w.dtype.itemsize
        + tn * 4
        + tm * tn * jnp.dtype(out_dtype).itemsize
    ) + tm * tn * 4
    return pl.pallas_call(
        _linear_kernel,
        out_shape=jax.ShapeDtypeStruct((M, N), out_dtype),
        grid=grid,
        in_specs=[
            pl.BlockSpec((tm, tk), lambda i, j, k: (i, k)),
            pl.BlockSpec((tk, tn), lambda i, j, k: (k, j)),
            pl.BlockSpec((1, tn), lambda i, j, k: (0, j)),
        ],
        out_specs=pl.BlockSpec((tm, tn), lambda i, j, k: (i, j)),
        scratch_shapes=[pltpu.VMEM((tm, tn), jnp.float32)],
        compiler_params=pltpu.CompilerParams(
            dimension_semantics=("parallel", "parallel", "arbitrary"),
            vmem_limit_bytes=_vmem_limit(nbytes),
        ),
    )(x, w, b.reshape(1, N).astype(jnp.float32))


# ---------------------------------------------------------------------------
# Output projection: out[b*S+s, :] = sum_h values[h, b*S+s, :] @ W_out[h] + b
# (reads the per-head attention values directly; head axis is the reduction)
# ---------------------------------------------------------------------------
def _out_proj_kernel(v_ref, w_ref, b_ref, o_ref, acc_ref):
    @pl.when(pl.program_id(2) == 0)
    def _init():
        acc_ref[...] = jnp.zeros_like(acc_ref)

    acc_ref[...] += jnp.dot(
        v_ref[...],
        w_ref[...].astype(jnp.bfloat16),
        preferred_element_type=jnp.float32,
    )

    @pl.when(pl.program_id(2) == pl.num_programs(2) - 1)
    def _finalize():
        o_ref[...] = (acc_ref[...] + b_ref[...]).astype(o_ref.dtype)


def _out_proj(values, w, b, *, tiles=(256, 512)):
    # values: (H, B*S, Dh) bf16, w: (E, E) bf16, b: (E,)
    H, BS, Dh = values.shape
    E = w.shape[1]
    w_h = w.reshape(H, Dh, E)
    tm = _pick_tile(BS, tiles[0], 8)
    tn = _pick_tile(E, tiles[1], 128)
    grid = (BS // tm, E // tn, H)
    nbytes = 2 * (tm * Dh * 2 + Dh * tn * 2 + tn * 4 + tm * tn * 4) + tm * tn * 4
    return pl.pallas_call(
        _out_proj_kernel,
        out_shape=jax.ShapeDtypeStruct((BS, E), jnp.float32),
        grid=grid,
        in_specs=[
            pl.BlockSpec((None, tm, Dh), lambda i, j, h: (h, i, 0)),
            pl.BlockSpec((None, Dh, tn), lambda i, j, h: (h, 0, j)),
            pl.BlockSpec((1, tn), lambda i, j, h: (0, j)),
        ],
        out_specs=pl.BlockSpec((tm, tn), lambda i, j, h: (i, j)),
        scratch_shapes=[pltpu.VMEM((tm, tn), jnp.float32)],
        compiler_params=pltpu.CompilerParams(
            dimension_semantics=("parallel", "parallel", "arbitrary"),
            vmem_limit_bytes=_vmem_limit(nbytes),
        ),
    )(values, w_h, b.reshape(1, E).astype(jnp.float32))


# ---------------------------------------------------------------------------
# Attention kernels.  Inputs per (batch, head) step come from qkv_t with layout
# (B, H, 3, S, Dh) bf16; rel' = rel*sqrt(Dh) with layout (H, S, Dh) bf16.
# Fused logits:  q@k^T*scale + q@rel^T  ==  (q*scale) @ (k + rel')^T.
# ---------------------------------------------------------------------------
def _attn_weights_kernel(q_ref, k_ref, v_ref, rel_ref, w_ref, o_ref):
    # q: (tq, Dh), k/v/rel: (S, Dh), w: (tq, S), o: (tq, Dh)
    Dh = q_ref.shape[-1]
    scale = 1.0 / math.sqrt(Dh)
    q = q_ref[...] * scale                       # bf16, O(tq*Dh)
    kr = k_ref[...] + rel_ref[...]               # bf16, O(S*Dh)
    s = lax.dot_general(q, kr, (((1,), (1,)), ((), ())),
                        preferred_element_type=jnp.float32)      # (tq, S)
    m = jnp.max(s, axis=-1, keepdims=True)
    e = jnp.exp(s - m)
    w = e / jnp.sum(e, axis=-1, keepdims=True)   # exact divide: weights are returned
    w_b = w.astype(jnp.bfloat16)
    w_ref[...] = w_b.astype(w_ref.dtype)
    o_ref[...] = jnp.dot(w_b, v_ref[...],
                         preferred_element_type=jnp.float32).astype(o_ref.dtype)


def _attn_flash_kernel(q_ref, k_ref, v_ref, rel_ref, o_ref, m_scr, l_scr, acc_scr):
    # q: (tq, Dh), k/v/rel: (tkv, Dh), o: (tq, Dh); online softmax over kv tiles.
    Dh = q_ref.shape[-1]
    scale = 1.0 / math.sqrt(Dh)
    ki = pl.program_id(3)

    @pl.when(ki == 0)
    def _init():
        m_scr[...] = jnp.full_like(m_scr, -jnp.inf)
        l_scr[...] = jnp.zeros_like(l_scr)
        acc_scr[...] = jnp.zeros_like(acc_scr)

    q = q_ref[...] * scale
    kr = k_ref[...] + rel_ref[...]
    s = lax.dot_general(q, kr, (((1,), (1,)), ((), ())),
                        preferred_element_type=jnp.float32)      # (tq, tkv)
    m_prev = m_scr[...]
    m_new = jnp.maximum(m_prev, jnp.max(s, axis=-1, keepdims=True))
    alpha = jnp.exp(m_prev - m_new)
    p = jnp.exp(s - m_new)
    l_scr[...] = alpha * l_scr[...] + jnp.sum(p, axis=-1, keepdims=True)
    acc_scr[...] = alpha * acc_scr[...] + jnp.dot(
        p.astype(jnp.bfloat16), v_ref[...], preferred_element_type=jnp.float32)
    m_scr[...] = m_new

    @pl.when(ki == pl.num_programs(3) - 1)
    def _finalize():
        o_ref[...] = (acc_scr[...] *
                      pl.reciprocal(l_scr[...], approx=True)).astype(o_ref.dtype)


def _attention(qkv_t, rel, *, return_weights, weights_dtype, tq, tkv):
    B, H, _, S, Dh = qkv_t.shape
    tq = _pick_tile(S, tq, 8)
    vals_shape = jax.ShapeDtypeStruct((H, B, S, Dh), jnp.bfloat16)

    if return_weights:
        grid = (B, H, S // tq)
        in_specs = [
            pl.BlockSpec((None, None, None, tq, Dh), lambda b, h, qi: (b, h, 0, qi, 0)),
            pl.BlockSpec((None, None, None, S, Dh), lambda b, h, qi: (b, h, 1, 0, 0)),
            pl.BlockSpec((None, None, None, S, Dh), lambda b, h, qi: (b, h, 2, 0, 0)),
            pl.BlockSpec((None, S, Dh), lambda b, h, qi: (h, 0, 0)),
        ]
        out_shape = (jax.ShapeDtypeStruct((B, H, S, S), weights_dtype), vals_shape)
        out_specs = (
            pl.BlockSpec((None, None, tq, S), lambda b, h, qi: (b, h, qi, 0)),
            pl.BlockSpec((None, None, tq, Dh), lambda b, h, qi: (h, b, qi, 0)),
        )
        nbytes = 2 * (tq * Dh * 2 + 3 * S * Dh * 2
                      + tq * S * jnp.dtype(weights_dtype).itemsize + tq * Dh * 2)
        weights, vals = pl.pallas_call(
            _attn_weights_kernel,
            out_shape=out_shape,
            grid=grid,
            in_specs=in_specs,
            out_specs=out_specs,
            compiler_params=pltpu.CompilerParams(
                dimension_semantics=("parallel", "parallel", "parallel"),
                vmem_limit_bytes=_vmem_limit(nbytes),
            ),
        )(qkv_t, qkv_t, qkv_t, rel)
        return weights, vals

    tkv = _pick_tile(S, tkv, 8)
    grid = (B, H, S // tq, S // tkv)
    in_specs = [
        pl.BlockSpec((None, None, None, tq, Dh), lambda b, h, qi, ki: (b, h, 0, qi, 0)),
        pl.BlockSpec((None, None, None, tkv, Dh), lambda b, h, qi, ki: (b, h, 1, ki, 0)),
        pl.BlockSpec((None, None, None, tkv, Dh), lambda b, h, qi, ki: (b, h, 2, ki, 0)),
        pl.BlockSpec((None, tkv, Dh), lambda b, h, qi, ki: (h, ki, 0)),
    ]
    out_specs = pl.BlockSpec((None, None, tq, Dh), lambda b, h, qi, ki: (h, b, qi, 0))
    nbytes = 2 * (tq * Dh * 2 + 3 * tkv * Dh * 2 + tq * Dh * 2) + tq * (2 + Dh) * 4
    vals = pl.pallas_call(
        _attn_flash_kernel,
        out_shape=vals_shape,
        grid=grid,
        in_specs=in_specs,
        out_specs=out_specs,
        scratch_shapes=[
            pltpu.VMEM((tq, 1), jnp.float32),
            pltpu.VMEM((tq, 1), jnp.float32),
            pltpu.VMEM((tq, Dh), jnp.float32),
        ],
        compiler_params=pltpu.CompilerParams(
            dimension_semantics=("parallel", "parallel", "parallel", "arbitrary"),
            vmem_limit_bytes=_vmem_limit(nbytes),
        ),
    )(qkv_t, qkv_t, qkv_t, rel)
    return None, vals


# ---------------------------------------------------------------------------
# Module wrapper
# ---------------------------------------------------------------------------
def init_params(key, context_size, embed_dim, num_heads):
    head_dim = embed_dim // num_heads
    k1, k2, k3 = jax.random.split(key, 3)

    def xavier(k, shape, fan_in, fan_out):
        bound = math.sqrt(6.0 / (fan_in + fan_out))
        return jax.random.uniform(k, shape, jnp.float32, -bound, bound)

    return {
        # stored (in, out) so forward is x @ W + b (same math as torch's x W^T + b)
        "w_qkv": xavier(k1, (embed_dim, 3 * embed_dim), embed_dim, 3 * embed_dim),
        "b_qkv": jnp.zeros((3 * embed_dim,), jnp.float32),
        "w_out": xavier(k2, (embed_dim, embed_dim), embed_dim, embed_dim),
        "b_out": jnp.zeros((embed_dim,), jnp.float32),
        "rel": xavier(
            k3,
            (num_heads, context_size, head_dim),
            context_size * head_dim,
            num_heads * head_dim,
        ),
    }


def multi_head_attention(params, x, num_heads, return_weights=True, *,
                         weights_dtype=jnp.bfloat16,
                         tq=128, tkv=512,
                         qkv_tiles=(512, 512, 512), proj_tiles=(256, 512)):
    B, S, E = x.shape
    H = num_heads
    Dh = E // H

    w_qkv = params["w_qkv"].astype(jnp.bfloat16)
    w_out = params["w_out"].astype(jnp.bfloat16)

    # 1) QKV projection; bf16 stage boundary halves HBM traffic of the (B,S,3E) slab.
    qkv = _linear(x.reshape(B * S, E), w_qkv, params["b_qkv"],
                  out_dtype=jnp.bfloat16, tiles=qkv_tiles)

    # 2) Layout plumbing (one plain-JAX bf16 pass): (B,S,H,3,Dh) -> (B,H,3,S,Dh) so
    #    each (batch, head) attention grid step gets contiguous per-head DMAs with
    #    (8,128)-clean last-two block dims.
    qkv_t = qkv.reshape(B, S, H, 3, Dh).transpose(0, 2, 3, 1, 4)

    # 3) Relative embeddings (last S rows), pre-multiplied by sqrt(Dh) so the kernel
    #    fuses logits as (q*scale) @ (k + rel')^T with a single bf16 add per kv tile.
    rel = (params["rel"][:, -S:, :] * math.sqrt(Dh)).astype(jnp.bfloat16)

    weights, vals = _attention(qkv_t, rel, return_weights=return_weights,
                               weights_dtype=weights_dtype, tq=tq, tkv=tkv)

    # 4) Output projection reads (H, B*S, Dh) values directly (head = reduction axis),
    #    so no merge/transpose pass over the attention output is needed.
    out = _out_proj(vals.reshape(H, B * S, Dh), w_out, params["b_out"],
                    tiles=proj_tiles).reshape(B, S, E)
    return out, weights


# ---------------------------------------------------------------------------
# Pure-JAX reference (replicates the torch forward exactly, incl. the skew steps)
# ---------------------------------------------------------------------------
def reference(params, x, num_heads):
    B, S, E = x.shape
    H = num_heads
    Dh = E // H
    qkv = x @ params["w_qkv"] + params["b_qkv"]
    qkv = qkv.reshape(B, S, H, 3 * Dh).transpose(0, 2, 1, 3)
    q, k, v = jnp.split(qkv, 3, axis=-1)
    rel = params["rel"][:, -S:, :]
    logits = jnp.einsum("bhik,bhjk->bhij", q, k) / math.sqrt(Dh)
    rel_logits = jnp.einsum("bhik,hjk->bhij", q, rel)
    # exact torch "skew" steps (cat zero row on dim=-2, reshape to same shape, drop row)
    zeros = jnp.zeros((B, H, 1, S), rel_logits.dtype)
    rel_logits = jnp.concatenate([zeros, rel_logits], axis=-2)
    rel_logits = rel_logits.reshape(B, H, S + 1, S)[:, :, 1:, :]
    logits = logits + rel_logits
    w = jax.nn.softmax(logits, axis=-1)
    vals = jnp.einsum("bhij,bhjd->bhid", w, v)
    merged = vals.transpose(0, 2, 1, 3).reshape(B, S, E)
    out = merged @ params["w_out"] + params["b_out"]
    return out, w


if __name__ == "__main__":
    B, S, E, H = 2, 16, 256, 4
    context_size = 32

    key = jax.random.PRNGKey(0)
    pkey, xkey = jax.random.split(key)
    params = init_params(pkey, context_size, E, H)
    x = jax.random.normal(xkey, (B, S, E), jnp.float32)

    # Small tiles so the toy shapes still exercise the multi-step grid paths
    # (K reduction in the linears, q/kv tiling in attention, head reduction in
    # the output projection).
    kw = dict(tq=8, tkv=8, qkv_tiles=(16, 128, 128), proj_tiles=(16, 128))

    out, attn_w = multi_head_attention(params, x, H, return_weights=True, **kw)
    out = jax.block_until_ready(out)
    attn_w = jax.block_until_ready(attn_w)

    ref_out, ref_w = reference(params, x, H)
    assert out.shape == (B, S, E) and attn_w.shape == (B, H, S, S)
    # bf16 matmul inputs / bf16 stage boundaries -> relaxed tolerance vs f32 reference
    assert jnp.allclose(out, ref_out, rtol=3e-2, atol=3e-2)
    assert jnp.allclose(attn_w.astype(jnp.float32), ref_w, rtol=3e-2, atol=3e-2)

    # weights-free fast path: flash-style kernel, never materialises (S,S) logits
    out_nw, w_nw = multi_head_attention(params, x, H, return_weights=False, **kw)
    out_nw = jax.block_until_ready(out_nw)
    assert w_nw is None
    assert jnp.allclose(out_nw, ref_out, rtol=3e-2, atol=3e-2)

    print("KERNEL_OK")
</pallas_src>

<mosaic_0001>
module attributes {stable_mosaic.version = 11 : i64} {
  func.func @_linear_kernel(%arg0: i32, %arg1: i32, %arg2: i32, %arg3: memref<16x128xf32, #tpu.memory_space<vmem>>, %arg4: memref<128x128xbf16, #tpu.memory_space<vmem>>, %arg5: memref<1x128xf32, #tpu.memory_space<vmem>>, %arg6: memref<16x128xbf16, #tpu.memory_space<vmem>>, %arg7: memref<16x128xf32, #tpu.memory_space<vmem>>) attributes {dimension_semantics = [#tpu.dimension_semantics<parallel>, #tpu.dimension_semantics<parallel>, #tpu.dimension_semantics<arbitrary>], iteration_bounds = array<i64: 2, 6, 2>, scalar_prefetch = 0 : i64, scratch_operands = 1 : i64, tpu.core_type = #tpu.core_type<tc>, window_params = [{transform_indices = @transform_0, window_bounds = array<i64: 16, 128>}, {transform_indices = @transform_1, window_bounds = array<i64: 128, 128>}, {transform_indices = @transform_2, window_bounds = array<i64: 1, 128>}, {transform_indices = @transform_3, window_bounds = array<i64: 16, 128>}]} {
    %c0_i32 = arith.constant 0 : i32
    %0 = arith.cmpi eq, %arg2, %c0_i32 : i32
    %1 = arith.extui %0 : i1 to i32
    %c0_i32_0 = arith.constant 0 : i32
    %2 = arith.cmpi ne, %1, %c0_i32_0 : i32
    scf.if %2 {
      %cst_9 = arith.constant 0.000000e+00 : f32
      %13 = vector.broadcast %cst_9 : f32 to vector<16x128xf32>
      %c0_10 = arith.constant 0 : index
      %c0_11 = arith.constant 0 : index
      %14 = vector.load %arg7[%c0_10, %c0_11] : memref<16x128xf32, #tpu.memory_space<vmem>>, vector<16x128xf32>
      tpu.vector_store %arg7[%c0_10, %c0_11], %13 {strides = array<i32>} : memref<16x128xf32, #tpu.memory_space<vmem>>, vector<16x128xf32>,
    } else {
    }
    %c0 = arith.constant 0 : index
    %c0_1 = arith.constant 0 : index
    %3 = vector.load %arg7[%c0, %c0_1] : memref<16x128xf32, #tpu.memory_space<vmem>>, vector<16x128xf32>
    %c0_2 = arith.constant 0 : index
    %c0_3 = arith.constant 0 : index
    %4 = vector.load %arg3[%c0_2, %c0_3] : memref<16x128xf32, #tpu.memory_space<vmem>>, vector<16x128xf32>
    %5 = arith.truncf %4 : vector<16x128xf32> to vector<16x128xbf16>
    %c0_4 = arith.constant 0 : index
    %c0_5 = arith.constant 0 : index
    %6 = vector.load %arg4[%c0_4, %c0_5] : memref<128x128xbf16, #tpu.memory_space<vmem>>, vector<128x128xbf16>
    %cst = arith.constant dense<0.000000e+00> : vector<16x128xf32>
    %7 = tpu.matmul %5, %6, %cst {dimension_numbers = #tpu.dot_dimension_numbers<[1], [0], [0], [1], [0, 0, 1, 1], [], []>} : vector<16x128xbf16>, vector<128x128xbf16>, vector<16x128xf32> -> vector<16x128xf32>
    %8 = arith.addf %3, %7 : vector<16x128xf32>
    %c0_6 = arith.constant 0 : index
    %c0_7 = arith.constant 0 : index
    %9 = vector.load %arg7[%c0_6, %c0_7] : memref<16x128xf32, #tpu.memory_space<vmem>>, vector<16x128xf32>
    tpu.vector_store %arg7[%c0_6, %c0_7], %8 {strides = array<i32>} : memref<16x128xf32, #tpu.memory_space<vmem>>, vector<16x128xf32>,
    %c1_i32 = arith.constant 1 : i32
    %10 = arith.cmpi eq, %arg2, %c1_i32 : i32
    %11 = arith.extui %10 : i1 to i32
    %c0_i32_8 = arith.constant 0 : i32
    %12 = arith.cmpi ne, %11, %c0_i32_8 : i32
    scf.if %12 {
      %c0_9 = arith.constant 0 : index
      %c0_10 = arith.constant 0 : index
      %13 = vector.load %arg7[%c0_9, %c0_10] : memref<16x128xf32, #tpu.memory_space<vmem>>, vector<16x128xf32>
      %c0_11 = arith.constant 0 : index
      %c0_12 = arith.constant 0 : index
      %14 = vector.load %arg5[%c0_11, %c0_12] : memref<1x128xf32, #tpu.memory_space<vmem>>, vector<1x128xf32>
      %15 = vector.broadcast %14 : vector<1x128xf32> to vector<16x128xf32>
      %16 = arith.addf %13, %15 : vector<16x128xf32>
      %17 = arith.truncf %16 : vector<16x128xf32> to vector<16x128xbf16>
      %c0_13 = arith.constant 0 : index
      %c0_14 = arith.constant 0 : index
      %18 = vector.load %arg6[%c0_13, %c0_14] : memref<16x128xbf16, #tpu.memory_space<vmem>>, vector<16x128xbf16>
      tpu.vector_store %arg6[%c0_13, %c0_14], %17 {strides = array<i32>} : memref<16x128xbf16, #tpu.memory_space<vmem>>, vector<16x128xbf16>,
    } else {
    }
    return
  }
  func.func @transform_0(%arg0: i32, %arg1: i32, %arg2: i32) -> (i32, i32) {
    %c0_i32 = arith.constant 0 : i32
    return %arg0, %arg2 : i32, i32
  }
  func.func @transform_1(%arg0: i32, %arg1: i32, %arg2: i32) -> (i32, i32) {
    %c0_i32 = arith.constant 0 : i32
    return %arg2, %arg1 : i32, i32
  }
  func.func @transform_2(%arg0: i32, %arg1: i32, %arg2: i32) -> (i32, i32) {
    %c0_i32 = arith.constant 0 : i32
    %c0_i32_0 = arith.constant 0 : i32
    return %c0_i32, %arg1 : i32, i32
  }
  func.func @transform_3(%arg0: i32, %arg1: i32, %arg2: i32) -> (i32, i32) {
    %c0_i32 = arith.constant 0 : i32
    return %arg0, %arg1 : i32, i32
  }
}

</mosaic_0001>

<bundles_post_ra>
// kernel: tpu_custom_call.1
= control target key start
LH: loop header
LB: loop body
LE: loop exit
PB: predicated region body
PF: predicated region fallthrough
CT: control target
= control target key end

     0   :  { %s1599_s0 = inlined_call_operand.hbm [shape: f32[32,256], index: 0, kind: input, shape index: {}]   ;;  %s1600_s1 = inlined_call_operand.hbm [shape: bf16[256,768], index: 1, kind: input, shape index: {}]   ;;  %s1601_s2 = inlined_call_operand.hbm [shape: f32[1,768], index: 2, kind: input, shape index: {}]   ;;  %s1602_s3 = inlined_call_operand.hbm [shape: bf16[32,768], index: 3, kind: output, shape index: {}]  }
   0x1   :  { %1616 = sst [smem:[#allocation28_spill]] %s1599_s0 }
   0x2   :  { %1617 = sst [smem:[#allocation29_spill]] %s1600_s1 }
   0x3   :  { %1618 = sst [smem:[#allocation30_spill]] %s1601_s2 }
   0x4   :  { %1619 = sst [smem:[#allocation31_spill]] %s1602_s3 }
   0x5   :  { %8 = vsyncpa [#allocation4], 0 }
   0x6   :  { %10 = vsyncpa [#allocation4 + $0x1], 0 }
   0x7   :  { %11 = vsyncpa [#allocation7], 0 }
   0x8   :  { %13 = vsyncpa [#allocation7 + $0x1], 0 }
   0x9   :  { %14 = vsyncpa [#allocation5], 0 }
   0xa   :  { %16 = vsyncpa [#allocation5 + $0x1], 0  ;;  %s1175_s12 = smov 0   ;;  %s1177_s13 = smov 0  }
   0xb   :  { %s1179_s14 = smov 0   ;;  %s1181_s15 = smov 0  }
   0xc   :  { %s1183_s16 = smov 0   ;;  %s1185_s17 = smov 0  }
   0xd   :  { %s1187_s18 = smov 0   ;;  %s1189_s19 = smov 0  }
   0xe   :  { %s1191_s20 = smov 0   ;;  %s1193_s21 = smov 0  }
   0xf   :  { %s1195_s22 = smov 0   ;;  %s1197_s23 = smov 0  }
  0x10   :  { %s1199_s24 = smov 0   ;;  %s1201_s25 = smov 0  }
  0x11   :  { %s1203_s26 = smov 0   ;;  %s1205_s27 = smov 0  }
  0x12   :  { %s1207_s28 = smov 0   ;;  %s1209_s29 = smov 0  }
  0x13   :  { %s1211_s30 = smov 0  }
  0x14 LB: > { %1620 = sst [smem:[#allocation14_spill]] %s1065_s12  ;;  %s34_s4 = sadd.s32 1, %s1125_s27  ;;  %s1137_s30 = sphi %s1211_s30, %s22_s30   ;;  %s1133_s29 = sphi %s1209_s29, %s1693_s29   ;;  %s1129_s28 = sphi %s1207_s28, %s1692_s28   ;;  %s1125_s27 = sphi %s1205_s27, %s1691_s27   ;;  %s1121_s26 = sphi %s1203_s26, %s1690_s26   ;;  %s1117_s25 = sphi %s1201_s25, %s1689_s25   ;;  %s1113_s24 = sphi %s1199_s24, %s1688_s24   ;;  %s1109_s23 = sphi %s1197_s23, %s1687_s23   ;;  %s1105_s22 = sphi %s1195_s22, %s1686_s22   ;;  %s1101_s21 = sphi %s1193_s21, %s1685_s21   ;;  %s1097_s20 = sphi %s1191_s20, %s1684_s20   ;;  %s1093_s19 = sphi %s1189_s19, %s1683_s19   ;;  %s1089_s18 = sphi %s1187_s18, %s1682_s18   ;;  %s1085_s17 = sphi %s1185_s17, %s1681_s17   ;;  %s1081_s16 = sphi %s1183_s16, %s1680_s16   ;;  %s1077_s15 = sphi %s1181_s15, %s1679_s15   ;;  %s1073_s14 = sphi %s1179_s14, %s1678_s14   ;;  %s1069_s13 = sphi %s1177_s13, %s1676_s13   ;;  %s1065_s12 = sphi %s1175_s12, %s1669_s12  }
  0x15   : > { %1621 = sst [smem:[#allocation15_spill]] %s1069_s13  ;;  %s37_s5 = sadd.s32 1, %s1129_s28 }
  0x16   : > { %1622 = sst [smem:[#allocation16_spill]] %s1077_s15  ;;  %p35_p0 = scmp.ge.s32.totalorder %s34_s4, 2 }
  0x17   : > { %1623 = sst [smem:[#allocation17_spill]] %s1081_s16  ;;  %p58_p1 = scmp.eq.s32.totalorder %s1137_s30, 0 }
  0x18   : > { %1624 = sst [smem:[#allocation18_spill]] %s1089_s18  ;;  %s78_s6 = sadd.s32 1, %s1097_s20 }
  0x19   : > { %1625 = sst [smem:[#allocation19_spill]] %s1097_s20  ;;  %p85_p2 = scmp.ne.s32.totalorder %s1097_s20, %s1093_s19 }
  0x1a   : > { %1626 = sst [smem:[#allocation20_spill]] %s1113_s24  ;;  %s1695_s4 = smov (%p35_p0, %s34_s4), 0 }
  0x1b   : > { %1627 = sst [smem:[#allocation21_spill]] %s1117_s25  ;;  %s1697_s5 = smov (!%p35_p0, %s37_s5), %s1129_s28 }
  0x1c   : > { %1628 = sst [smem:[#allocation22_spill]] %s1121_s26  ;;  %s1283_s7 = ssub.s32 %s1125_s27, %s1695_s4 }
  0x1d   : > { %1629 = sst [smem:[#allocation23_spill]] %s1695_s4  ;;  %p1287_p3 = por %p85_p2, %p58_p1 }
  0x1e   : > { %p39_p4 = scmp.ge.s32.totalorder %s1697_s5, 6  ;;  %p91_p5 = scmp.ne.s32.totalorder %s1093_s19, %s1089_s18 }
  0x1f   : > { %p1612_p6 = scmp.lt.s32.totalorder %s1137_s30, 24  ;;  %s192_s10 = sand.u32 1, %s1137_s30  }
  0x20   : > { %s1298_s9 = scalar_select %p39_p4, 0, %s1697_s5  }
  0x21   : > { %s194_s11 = sand.u32 1, %s1097_s20   ;;  %s663_s26 = smul.u32 96, %s1125_s27 }
  0x22   : > { %1631 = sst [smem:[#allocation24_spill]] %s1298_s9  ;;  %s1304_s4 = ssub.s32 %s1129_s28, %s1298_s9 }
  0x23   : > { %s75_s3 = sor.u32 %s1304_s4, %s1283_s7  ;;  %s598_s25 = sshll.u32 %s194_s11, 6 }
  0x24   : > { %p76_p7 = scmp.eq.s32.totalorder %s75_s3, 0  ;;  %s196_s24 = scalar_lea.vmem [#allocation6], %s598_s25 }
  0x25   : > { %s205_s2 = sshll.u32 %s196_s24, 4  ;;  %s202_s13 = sadd.s32 %s1129_s28, %s663_s26  ;;  %s206_s2 = int_to_ptr.vmem [resolvable:$true] %s205_s2 }
  0x26   : > { %s1310_s12 = scalar_select %p76_p7, %s1097_s20, %s78_s6  }
  0x27   : > { %s601_s15 = sshll.u32 %s202_s13, 6  ;;  %p1317_p8 = pnand %p1612_p6, %p1287_p3 }
  0x28   : > { %1632 = sst [smem:[#allocation25_spill]] %s1310_s12  ;;  %p603_p9 = scmp.ge.s32.totalorder %s1137_s30, 1 }
  0x29   : > { %s1634_s1 = sld [smem:[#allocation29_spill]]  ;;  %s1325_s3 = scalar_lea.sflag [#allocation7], %s192_s10 }
  0x2a   : > { %p863_p10 = pneg %p1317_p8  ;;  %s874_s24 = scalar_lea.vmem %s206_s2, 1024 }
  0x2b   : > { %p875_p11 = scmp.ne.s32.totalorder %s206_s2, %s874_s24  ;;  %s1139_s13 = smov [#allocation6]  }
  0x2c   : > { %s879_s25 = sshll.u32 %s1139_s13, 4  ;;  %s880_s25 = int_to_ptr.vmem [resolvable:$false] %s879_s25 }
  0x2d   : > { %p877_p12 = pnand %p875_p11, %p863_p10  ;;  %s881_s26 = scalar_lea.vmem %s880_s25, 2048 }
  0x2e   : > { %p882_p0 = scmp.lt.s32.totalorder %s206_s2, %s880_s25  ;;  %p883_p2 = scmp.lt.s32.totalorder %s881_s26, %s874_s24 }
  0x2f   : > { %s204_s11 = scalar_lea.hbm %s1634_s1, %s601_s15  ;;  %p878_p13 = pneg %p877_p12 }
  0x30   : > { %p884_p3 = por %p883_p2, %p882_p0 }
  0x32   : > { %p885_p7 = pnand %p884_p3, %p878_p13 }
  0x34   : > { %888 = shalt.err (!%p885_p7)
}
  0x35   : > { %s1140_s18 = smov 384   ;;  %s1141_s15 = smov 64  }
  0x36   : > { %s1142_s6 = smov 4   ;;  %p230_p10 = scmp.lt.s32.totalorder %s1137_s30, 25 }
  0x37   : > { %679 = dma.hbm_to_vmem [thread:$0]  (!%p1317_p8), %s204_s11, 1024, %s206_s2, %s1325_s3, %s1140_s18, %s1141_s15, %s1142_s6  }
  0x38   : > { %p1335_p11 = pnand %p603_p9, %p230_p10  ;;  %s41_s9 = sadd.s32 1, %s1133_s29 }
  0x39   : > { %s50_s10 = sadd.s32 1, %s1109_s23  ;;  %s1699_s9 = smov (!%p39_p4, %s41_s9), %s1133_s29 }
  0x3a   : > { %s1635_s8 = scalar_select %p1335_p11, 1, 0 }
  0x3b   : > { %p57_p12 = scmp.ne.s32.totalorder %s1109_s23, %s1105_s22  ;;  %p63_p13 = scmp.ne.s32.totalorder %s1105_s22, %s1101_s21 }
  0x3c   : > { %1636 = sst [smem:[#allocation26_spill]] %s1635_s8  ;;  %p43_p0 = scmp.ge.s32.totalorder %s1699_s9, 2 }
  0x3d   : > { %s132_s16 = sadd.s32 1, %s1073_s14  ;;  %p1351_p8 = por %p58_p1, %p57_p12 }
  0x3e   : > { %s169_s11 = sand.u32 1, %s1109_s23   ;;  %s1701_s9 = smov (%p43_p0, %s1699_s9), 0 }
  0x3f   : > { %1638 = sst [smem:[#allocation27_spill]] %s1701_s9  ;;  %s594_s5 = sshll.u32 %s169_s11, 4 }
  0x40   : > { %s45_s24 = ssub.s32 %s1133_s29, %s1701_s9  ;;  %s626_s26 = sshll.u32 %s1133_s29, 2 }
  0x41   : > { %s47_s13 = sor.u32 %s1283_s7, %s45_s24  ;;  %s129_s25 = sor.u32 %s1304_s4, %s45_s24 }
  0x42   : > { %p48_p4 = scmp.eq.s32.totalorder %s47_s13, 0  ;;  %p130_p9 = scmp.eq.s32.totalorder %s129_s25, 0 }
  0x43   : > { %s173_s18 = scalar_lea.vmem [#allocation3], %s594_s5  ;;  %s179_s12 = sadd.s32 %s1125_s27, %s626_s26 }
  0x44   : > { %s182_s15 = sshll.u32 %s173_s18, 4  ;;  %s597_s20 = sshll.u32 %s179_s12, 7  ;;  %s183_s15 = int_to_ptr.vmem [resolvable:$true] %s182_s15 }
  0x45   : > { %s1364_s6 = scalar_select %p48_p4, %s1109_s23, %s50_s10  }
  0x46   : > { %s1367_s1 = scalar_select %p130_p9, %s1073_s14, %s132_s16  }
  0x47   : > { %p1374_p2 = pnand %p1612_p6, %p1351_p8  ;;  %s1640_s0 = sld [smem:[#allocation28_spill]] }
  0x48   : > { %s170_s5 = scalar_lea.sflag [#allocation4], %s169_s11  ;;  %s902_s10 = scalar_lea.vmem %s183_s15, 256 }
  0x49   : > { %p891_p3 = pneg %p1374_p2  ;;  %p903_p7 = scmp.ne.s32.totalorder %s183_s15, %s902_s10 }
  0x4a   : > { %s1143_s16 = smov [#allocation3]  }
  0x4b   : > { %p905_p10 = pnand %p903_p7, %p891_p3  ;;  %s907_s12 = sshll.u32 %s1143_s16, 4  ;;  %s908_s12 = int_to_ptr.vmem [resolvable:$false] %s907_s12 }
  0x4c   : > { %s909_s2 = scalar_lea.vmem %s908_s12, 512  ;;  %p910_p0 = scmp.lt.s32.totalorder %s183_s15, %s908_s12 }
  0x4d   : > { %s181_s13 = scalar_lea.hbm %s1640_s0, %s597_s20  ;;  %p906_p12 = pneg %p905_p10 }
  0x4e   : > { %p911_p8 = scmp.lt.s32.totalorder %s909_s2, %s902_s10 }
  0x50   : > { %p912_p4 = por %p911_p8, %p910_p0 }
  0x52   : > { %p913_p9 = pnand %p912_p4, %p906_p12 }
  0x54   : > { %916 = shalt.err (!%p913_p9)
}
  0x55   : > { %s1144_s25 = smov 256   ;;  %s1642_s11 = sld [smem:[#allocation17_spill]] }
  0x56   : > { %s1643_s26 = sld [smem:[#allocation16_spill]]  ;;  %s1145_s7 = smov 128  }
  0x57   : > { %s1644_s18 = sld [smem:[#allocation15_spill]]  ;;  %s1146_s24 = smov 8  }
  0x58   : > { %676 = dma.hbm_to_vmem [thread:$0]  (!%p1374_p2), %s181_s13, 256, %s183_s15, %s170_s5, %s1144_s25, %s1145_s7, %s1146_s24  }
  0x59   : > { %s1645_s10 = sld [smem:[#allocation14_spill]]  ;;  %s1386_s16 = sadd.s32 4294967295, %s1137_s30  }
  0x5a   : > { %s591_s12 = sadd.s32 4294967294, %s1137_s30   ;;  %p64_p3 = scmp.eq.s32.totalorder %s1386_s16, 0 }
  0x5b   : > { %p102_p7 = scmp.eq.s32.totalorder %s1304_s4, 0  ;;  %s104_s2 = sadd.s32 1, %s1085_s17 }
  0x5c   : > { %p1395_p10 = por %p64_p3, %p63_p13  ;;  %p1402_p12 = por %p91_p5, %p64_p3 }
  0x5d   : > { %s1407_s15 = scalar_select %p102_p7, %s1085_s17, %s104_s2  }
  0x5e   : > { %s1646_s0 = scalar_select %p1395_p10, 1, 0 }
  0x5f   : > { %p111_p2 = scmp.ne.s32.totalorder %s1085_s17, %s1642_s11  ;;  %p117_p0 = scmp.ne.s32.totalorder %s1642_s11, %s1643_s26 }
  0x60   : > { %p142_p8 = scmp.ne.s32.totalorder %s1073_s14, %s1644_s18  ;;  %p143_p4 = scmp.eq.s32.totalorder %s1386_s16, 23 }
  0x61   : > { %p113_p9 = por %p111_p2, %p58_p1  ;;  %p1418_p6 = por %p117_p0, %p64_p3 }
  0x62   : > { %p1422_p13 = por %p143_p4, %p142_p8  ;;  %p148_p5 = scmp.ne.s32.totalorder %s1644_s18, %s1645_s10 }
  0x63   : > { %p149_p10 = scmp.eq.s32.totalorder %s591_s12, 23  ;;  %s217_s13 = sand.u32 1, %s1085_s17  }
  0x64   : > { %s1649_s4 = scalar_select %p1422_p13, 1, 0 }
  0x65   : > { %s602_s5 = sshll.u32 %s1129_s28, 4  ;;  %p1430_p7 = por %p149_p10, %p148_p5 }
  0x66   : > { %s1651_s26 = sld [smem:[#allocation30_spill]]  ;;  %s218_s24 = scalar_lea.vmem [#allocation8], %s217_s13 }
  0x67   : > { %s1650_s25 = scalar_select %p1430_p7, 1, 0 }
  0x68   : > { %s225_s2 = sshll.u32 %s218_s24, 4  ;;  %p1652_p1 = scmp.lt.s32.totalorder %s1137_s30, 24  ;;  %s226_s2 = int_to_ptr.vmem [resolvable:$true] %s225_s2 }
  0x69   : > { %s930_s18 = scalar_lea.vmem %s226_s2, 16  ;;  %s1147_s10 = smov [#allocation8]  }
  0x6a   : > { %p1439_p3 = pnand %p1652_p1, %p113_p9  ;;  %p931_p10 = scmp.ne.s32.totalorder %s226_s2, %s930_s18 }
  0x6b   : > { %s935_s12 = sshll.u32 %s1147_s10, 4  ;;  %s936_s12 = int_to_ptr.vmem [resolvable:$false] %s935_s12 }
  0x6c   : > { %s223_s7 = scalar_lea.hbm %s1651_s26, %s602_s5  ;;  %p919_p2 = pneg %p1439_p3 }
  0x6d   : > { %s937_s20 = scalar_lea.vmem %s936_s12, 32  ;;  %p938_p4 = scmp.lt.s32.totalorder %s226_s2, %s936_s12 }
  0x6e   : > { %p933_p0 = pnand %p931_p10, %p919_p2  ;;  %p939_p5 = scmp.lt.s32.totalorder %s937_s20, %s930_s18 }
  0x70   : > { %p934_p8 = pneg %p933_p0  ;;  %p940_p7 = por %p939_p5, %p938_p4 }
  0x72   : > { %p941_p13 = pnand %p940_p7, %p934_p8 }
  0x74   : > { %944 = shalt.err (!%p941_p13)
}
  0x75   : > { %682 = dma.hbm_to_vmem [thread:$0]  (!%p1439_p3), %s223_s7, 16, %s226_s2, %s1325_s3  }
  0x76   : > { %234 = sbr.rel (%p1335_p11) target bundleno = 427 (0x1ab), region = 32  ;;  %s236_s5 = sand.u32 (!%p1335_p11), 1, %s1105_s22  }
  0x77   : > { %s1451_s11 = sshll.u32 (!%p1335_p11), %s236_s5, 4  ;;  %s237_s26 = scalar_lea.sflag (!%p1335_p11), [#allocation4], %s236_s5 }
  0x78   : > { %s240_s24 = scalar_lea.vmem (!%p1335_p11), [#allocation3], %s1451_s11  ;;  %p1655_p9 = scmp.ne.s32.totalorder (!%p1335_p11), %s1646_s0, 0 }
  0x7b   : > { %1048 = dma.done.wait (%p1655_p9), %s237_s26, 256  }
  0x7c   : > { %1050 = vsyncadd (%p1655_p9), %s237_s26, 4294967040  ;;  %s245_s3 = sand.u32 1, %s1386_s16   ;;  %s247_s9 = sand.u32 1, %s1093_s19  }
  0x7d   : > { %s605_s7 = sshll.u32 %s247_s9, 6  ;;  %s246_s2 = scalar_lea.sflag [#allocation7], %s245_s3 }
  0x7e   : > { %s1460_s18 = scalar_lea.vmem [#allocation6], %s605_s7 }
  0x7f   : > { %1052 = dma.done.wait (%p1402_p12), %s246_s2, 1024  }
  0x80   : > { %1054 = vsyncadd (%p1402_p12), %s246_s2, 4294966272  ;;  %s1656_s10 = sld [smem:[#allocation17_spill]] }
  0x86   : > { %s256_s12 = sand.u32 1, %s1656_s10  }
  0x87   : > { %s1467_s20 = scalar_lea.vmem [#allocation8], %s256_s12 }
  0x88   : > { %1056 = dma.done.wait (%p1418_p6), %s246_s2, 16  }
  0x89   : > { %1058 = vsyncadd (%p1418_p6), %s246_s2, 4294967280  ;;  %s1657_s0 = sld [smem:[#allocation15_spill]] }
  0x8a   : > { %s1658_s8 = sld [smem:[#allocation20_spill]] }
  0x8f   : > { %s286_s16 = sand.u32 1, %s1657_s0  }
  0x90   : > { %s1476_s13 = sshll.u32 %s286_s16, 3  ;;  %p607_p11 = scmp.ne.s32.totalorder %s1658_s8, 0 }
  0x91   : > { %s288_s5 = scalar_lea.vmem [#allocation9], %s1476_s13 }
  0x92   : > { %296 = sbr.rel (%p607_p11) target bundleno = 153 (0x99), region = 48 }
  0x97   : > { %v1148_v0 = vmov 0.0  }
  0x98   : > { %297 = vst [vmem:[#allocation2] sm:$0xff] %v1148_v0  ;;  %298 = vst [vmem:[#allocation2 + $0x8] sm:$0xff] %v1148_v0 }
  0x99 PF: > { %v853_v1 = vld [vmem:[%s1460_s18 + $0x38] sm:$0xff]   ;;  %v1149_v2 = vmov 0.0   ;;  %v854_v3 = vld [vmem:[%s1460_s18 + $0x30] sm:$0xff]   ;;  %vm1150_vm0 = vmmov 0   ;;  %v855_v4 = vld [vmem:[%s1460_s18 + $0x28] sm:$0xff]   ;;  %s1659_s21 = sld [smem:[#allocation20_spill]] }
  0x9a   : > { %643 = vmatprep.subr.bf16.mxu0 %v1149_v2  ;;  %659 = vmatprep.mubr.msk.bf16.mxu0 %vm1150_vm0, %v1149_v2  ;;  %v856_v5 = vld [vmem:[%s1460_s18 + $0x20] sm:$0xff]   ;;  %v857_v6 = vld [vmem:[%s1460_s18 + $0x18] sm:$0xff]   ;;  %v858_v7 = vld [vmem:[%s1460_s18 + $0x10] sm:$0xff]  }
  0x9b   : > { %644 = vmatpush3.bf16.msra.mxu0 %v853_v1  ;;  %v859_v8 = vld [vmem:[%s1460_s18 + $0x8] sm:$0xff]   ;;  %v860_v9 = vld [vmem:[%s1460_s18] sm:$0xff]  }
  0x9c   : > { %645 = vmatprep.subr.bf16.mxu0 %v1149_v2  ;;  %v301_v10 = vld [vmem:[%s240_s24] sm:$0xff]  ;;  %v302_v11 = vld [vmem:[%s240_s24 + $0x8] sm:$0xff] }
  0x9d   : > { %v303_v12 = vpack.c.bf16 %v302_v11, %v301_v10 }
  0x9f   : > { %646 = vmatpush3.bf16.msra.mxu0 %v854_v3  ;;  %v299_v13 = vld [vmem:[#allocation2] sm:$0xff]  ;;  %v300_v17 = vld [vmem:[#allocation2 + $0x8] sm:$0xff]  ;;  %p616_p6 = scmp.ne.s32.totalorder %s1659_s21, 1 }
  0xa0   : > { %647 = vmatprep.subr.bf16.mxu0 %v1149_v2 }
  0xa3   : > { %648 = vmatpush3.bf16.msra.mxu0 %v855_v4 }
  0xa4   : > { %649 = vmatprep.subr.bf16.mxu0 %v1149_v2 }
  0xa7   : > { %650 = vmatpush3.bf16.msra.mxu0 %v856_v5 }
  0xa8   : > { %651 = vmatprep.subr.bf16.mxu0 %v1149_v2 }
  0xab   : > { %652 = vmatpush3.bf16.msra.mxu0 %v857_v6 }
  0xac   : > { %653 = vmatprep.subr.bf16.mxu0 %v1149_v2 }
  0xaf   : > { %654 = vmatpush3.bf16.msra.mxu0 %v858_v7 }
  0xb0   : > { %655 = vmatprep.subr.bf16.mxu0 %v1149_v2 }
  0xb3   : > { %656 = vmatpush3.bf16.msra.mxu0 %v859_v8 }
  0xb4   : > { %657 = vmatprep.subr.bf16.mxu0 %v1149_v2 }
  0xb7   : > { %658 = vmatpush3.bf16.msra.mxu0 %v860_v9 }
  0xba   : > { %660 = vmatmul.mubr.bf16.vlgmr.msra.gmra.mxu0 %v303_v12 }
 0x17a   : > { %v402_v14 = vpop.f32.mrf.mxu0 }
 0x17b   : > { %v409_v15 = vadd.f32 %v402_v14, %v299_v13 }
 0x17c   : > { %v661_v16 = vpop.f32.mrf.mxu0 }
 0x17d   : > { %411 = vst [vmem:[#allocation2] sm:$0xff] %v409_v15  ;;  %416 = sbr.rel (%p616_p6) target bundleno = 398 (0x18e), region = 52 }
 0x17e   : > { %v405_v18 = vpop.f32.mrf.mxu0 }
 0x17f   : > { %v410_v19 = vadd.f32 %v405_v18, %v300_v17 }
 0x180   : > { %v662_v20 = vpop.f32.mrf.mxu0 }
 0x181   : > { %412 = vst [vmem:[#allocation2 + $0x8] sm:$0xff] %v410_v19 }
 0x182   : > { %v617_v23 = vld [vmem:[%s1467_s20] ss:$0 sm:$0xff] }
 0x184   : > { %v417_v21 = vld [vmem:[#allocation2] sm:$0xff] }
 0x185   : > { %v426_v24 = vadd.f32 %v617_v23, %v417_v21 }
 0x188   : > { %v418_v22 = vld [vmem:[#allocation2 + $0x8] sm:$0xff] }
 0x189   : > { %v427_v25 = vadd.f32 %v617_v23, %v418_v22 }
 0x18b   : > { %v632_v26 = vpack.c.bf16 %v427_v25, %v426_v24 }
 0x18d   : > { %633 = vst [vmem:[%s288_s5] sm:$0xff] %v632_v26  }
 0x18e PF: > { %s1660_s11 = sld [smem:[#allocation22_spill]]  ;;  %s454_s9 = sshll.u32 %s288_s5, 4  ;;  %s1500_s9 = int_to_ptr.vmem [resolvable:$true] %s454_s9 }
 0x18f   : > { %s1661_s26 = sld [smem:[#allocation21_spill]]  ;;  %s1509_s8 = scalar_lea.sflag [#allocation5], %s286_s16 }
 0x190   : > { %s1663_s12 = sld [smem:[#allocation31_spill]]  ;;  %s945_s21 = scalar_lea.vmem %s1500_s9, 128 }
 0x191   : > { %p946_p12 = scmp.ne.s32.totalorder %s1500_s9, %s945_s21  ;;  %p1665_p13 = scmp.ne.s32.totalorder %s1649_s4, 0 }
 0x192   : > { %s1151_s13 = smov [#allocation9]  }
 0x193   : > { %p947_p7 = pnand %p946_p12, %p1665_p13  ;;  %s949_s5 = sshll.u32 %s1151_s13, 4  ;;  %s950_s5 = int_to_ptr.vmem [resolvable:$false] %s949_s5 }
 0x194   : > { %s664_s3 = smul.u32 12, %s1660_s11  ;;  %s951_s11 = scalar_lea.vmem %s950_s5, 256 }
 0x195   : > { %p948_p1 = pneg %p947_p7  ;;  %p952_p3 = scmp.lt.s32.totalorder %s1500_s9, %s950_s5 }
 0x196   : > { %s451_s7 = sadd.s32 %s1661_s26, %s664_s3  ;;  %s1664_s0 = smov %s1663_s12 }
 0x197   : > { %s623_s2 = sshll.u32 %s451_s7, 6  ;;  %p953_p2 = scmp.lt.s32.totalorder %s951_s11, %s945_s21 }
 0x198   : > { %s1505_s20 = scalar_lea.hbm %s1663_s12, %s623_s2 }
 0x199   : > { %p954_p10 = por %p953_p2, %p952_p3 }
 0x19b   : > { %p955_p0 = pnand %p954_p10, %p948_p1 }
 0x19d   : > { %958 = shalt.err (!%p955_p0)
}
 0x19e   : > { %s959_s16 = scalar_lea.hbm %s1505_s20, 128  ;;  %s963_s3 = scalar_lea.hbm %s1664_s0, 1536 }
 0x19f   : > { %p960_p8 = scmp.ne.s32.totalorder %s1505_s20, %s959_s16  ;;  %p964_p9 = scmp.lt.s32.totalorder %s1505_s20, %s1664_s0 }
 0x1a0   : > { %p965_p11 = scmp.lt.s32.totalorder %s963_s3, %s959_s16 }
 0x1a1   : > { %p961_p4 = pnand %p960_p8, %p1665_p13 }
 0x1a2   : > { %p966_p6 = por %p965_p11, %p964_p9 }
 0x1a3   : > { %p962_p5 = pneg %p961_p4 }
 0x1a5   : > { %p967_p12 = pnand %p966_p6, %p962_p5 }
 0x1a7   : > { %970 = shalt.err (!%p967_p12)
}
 0x1a8   : > { %s1152_s18 = smov 64   ;;  %s1153_s10 = smov 384  }
 0x1a9   : > { %s1154_s12 = smov 4  }
 0x1aa   : > { %671 = dma.vmem_to_hbm [thread:$0]  (%p1665_p13), %s1500_s9, 128, %s1505_s20, %s1509_s8, %s1152_s18, %s1153_s10, %s1154_s12  }
 0x1ab PF: > { %s1666_s21 = sld [smem:[#allocation14_spill]]  ;;  %p688_p7 = scmp.ge.s32.totalorder %s1137_s30, 2 }
 0x1ac   : > { %p1667_p1 = scmp.ne.s32.totalorder %s1650_s25, 0 }
 0x1ae   : > { %p684_p3 = pnand %p688_p7, %p1667_p1 }
 0x1b0   : > { %p685_p2 = pneg %p684_p3 }
 0x1b1   : > { %s469_s13 = sand.u32 1, %s1666_s21  }
 0x1b2   : > { %s470_s5 = scalar_lea.sflag [#allocation5], %s469_s13 }
 0x1b3   : > { %1060 = dma.done.wait (%p685_p2), %s470_s5, 128  }
 0x1b4   : > { %1062 = vsyncadd (%p685_p2), %s470_s5, 4294967168  ;;  %s22_s30 = sadd.s32 1, %s1137_s30   ;;  %s1669_s12 = sld [smem:[#allocation15_spill]] }
 0x1b5   : > { %p1537_p10 = scmp.ge.s32.totalorder %s22_s30, 26   ;;  %s1670_s4 = sld [smem:[#allocation17_spill]] }
 0x1b6   : > { %s1671_s9 = smov %s1407_s15  ;;  %s1672_s20 = sld [smem:[#allocation19_spill]] }
 0x1b7   : > { %s1673_s25 = sld [smem:[#allocation25_spill]]  ;;  %s1676_s13 = smov %s1073_s14 }
 0x1b8   : > { %s1674_s8 = sld [smem:[#allocation23_spill]]  ;;  %s1678_s14 = smov %s1367_s1 }
 0x1b9   : > { %s1675_s3 = sld [smem:[#allocation24_spill]]  ;;  %s1680_s16 = smov %s1085_s17 }
 0x1ba   : > { %s1677_s7 = sld [smem:[#allocation27_spill]]  ;;  %s1681_s17 = smov %s1671_s9 }
 0x1bb   : > { %s1679_s15 = smov %s1670_s4  ;;  %s1682_s18 = smov %s1093_s19 }
 0x1bc   : > { %s1683_s19 = smov %s1672_s20  ;;  %s1685_s21 = smov %s1105_s22 }
 0x1bd   : > { %s1684_s20 = smov %s1673_s25  ;;  %s1686_s22 = smov %s1109_s23 }
 0x1be   : > { %s1687_s23 = smov %s1364_s6  ;;  %s1688_s24 = smov %s1125_s27 }
 0x1bf   : > { %s1689_s25 = smov %s1129_s28  ;;  %s1690_s26 = smov %s1133_s29 }
 0x1c0   : > { %s1691_s27 = smov %s1674_s8  ;;  %s1692_s28 = smov %s1675_s3 }
 0x1c1   : > { %s1693_s29 = smov %s1677_s7  ;;  %21 = sbr.rel (!%p1537_p10) target bundleno = 20 (0x14), region = 109 }
 0x1c6   :  { %475 = vsyncpa [#allocation4], 1 }
 0x1c7   :  { %477 = vsyncpa [#allocation4 + $0x1], 1 }
 0x1c8   :  { %478 = vsyncpa [#allocation7], 1 }
 0x1c9   :  { %480 = vsyncpa [#allocation7 + $0x1], 1 }
 0x1ca   :  { %481 = vsyncpa [#allocation5], 1 }
 0x1cb   :  { %483 = vsyncpa [#allocation5 + $0x1], 1 }

</bundles_post_ra>
